<compile_context>
chip_gen: v7x
topology: tpu7x:2x2x1
jax: 0.10.0
libtpu: 0.0.40
codegen_flags: <defaults>
</compile_context>

<pallas_src>
import math

import jax
import jax.numpy as jnp
from jax.experimental import pallas as pl
from jax.experimental.pallas import tpu as pltpu

LANE = 128  # TPU lane width / MXU-friendly tile


def _round_up(x, m):
    return (x + m - 1) // m * m


def qnetwork_kernel(s_ref, a_ref, w1s_ref, w1a_ref, b1_ref,
                    w2_ref, b2_ref, wc_ref, bc_ref, q_ref):
    Hp = wc_ref.shape[1]

    # Layer 1 (both heads fused into one 2*Hp-wide matmul). The concat of
    # [state, action] is realized as two split matmuls; bf16 cast in-kernel.
    s = s_ref[...].astype(jnp.bfloat16)
    a = a_ref[...].astype(jnp.bfloat16)
    h = (jnp.dot(s, w1s_ref[...], preferred_element_type=jnp.float32)
         + jnp.dot(a, w1a_ref[...], preferred_element_type=jnp.float32)
         + b1_ref[...])
    h = jnp.maximum(h, 0.0)

    # Layer 2: block-diagonal fused weight keeps the two heads independent;
    # recast activations to bf16 only for the MXU input.
    h = jnp.dot(h.astype(jnp.bfloat16), w2_ref[...],
                preferred_element_type=jnp.float32) + b2_ref[...]
    h = jnp.maximum(h, 0.0)

    # Heads (out_features == 1): VPU multiply + lane reduction on each half,
    # then a single lane-dense (2, TB) store for both q values.
    v1 = jnp.sum(h[:, :Hp] * wc_ref[0:1, :], axis=-1) + bc_ref[0]
    v2 = jnp.sum(h[:, Hp:] * wc_ref[1:2, :], axis=-1) + bc_ref[1]
    q_ref[...] = jnp.concatenate([v1.reshape(1, -1), v2.reshape(1, -1)], axis=0)


def qnetwork_forward(state, action, params, *, batch_tile=2048, interpret=False):
    """state: [B, num_inputs] f32, action: [B, num_actions] f32 -> (q1, q2) each [B, 1] f32."""
    (w1, b1, w2, b2, w3, b3, w4, b4, w5, b5, w6, b6) = params
    B, Si = state.shape
    Ai = action.shape[1]
    F = Si + Ai
    H = w1.shape[1]
    Hp = _round_up(H, LANE)      # pad hidden dim of each head to full lane width
    H2 = 2 * Hp                  # fused (both heads) hidden width

    # ---- batch tiling -------------------------------------------------------
    if B <= batch_tile:
        if B >= 256:
            # Two equal lane-aligned tiles so the "parallel" axis shards across
            # both v7x TensorCores (no effect on single-TC v5e/v6e).
            TB = _round_up(-(-B // 2), LANE)
            Bp = 2 * TB
        else:
            TB = _round_up(B, 8)
            Bp = TB
    else:
        TB = _round_up(batch_tile, LANE)
        Bp = _round_up(B, TB)
    grid = (Bp // TB,)

    if Bp != B:  # only copy the activation stream when padding is unavoidable
        state = jnp.pad(state, ((0, Bp - B), (0, 0)))
        action = jnp.pad(action, ((0, Bp - B), (0, 0)))

    # ---- fused / padded weights (exact: padded units are 0 after ReLU and ---
    # ---- have zero outgoing weights) ----------------------------------------
    def pad2(arr, rows_to, cols_to):
        return jnp.pad(arr, ((0, rows_to - arr.shape[0]), (0, cols_to - arr.shape[1])))

    def pad1(vec, n):
        v = vec.reshape(-1)
        return jnp.pad(v, (0, n - v.shape[0]))

    w1f = jnp.concatenate([pad2(w1, F, Hp), pad2(w4, F, Hp)], axis=1)   # (F, 2Hp)
    w1s = w1f[:Si].astype(jnp.bfloat16)                                  # (Si, 2Hp)
    w1a = w1f[Si:].astype(jnp.bfloat16)                                  # (Ai, 2Hp)
    b1f = jnp.concatenate([pad1(b1, Hp), pad1(b4, Hp)]).reshape(1, H2).astype(jnp.float32)

    z = jnp.zeros((Hp, Hp), jnp.float32)
    w2f = jnp.concatenate(
        [jnp.concatenate([pad2(w2, Hp, Hp), z], axis=1),
         jnp.concatenate([z, pad2(w5, Hp, Hp)], axis=1)],
        axis=0).astype(jnp.bfloat16)                                     # (2Hp, 2Hp) block-diag
    b2f = jnp.concatenate([pad1(b2, Hp), pad1(b5, Hp)]).reshape(1, H2).astype(jnp.float32)

    wc = jnp.stack([pad1(w3, Hp), pad1(w6, Hp)], axis=0).astype(jnp.float32)   # (2, Hp)
    bc = jnp.concatenate([b3.reshape(-1), b6.reshape(-1)]).astype(jnp.float32)  # (2,) -> SMEM

    # ---- specs ---------------------------------------------------------------
    def wfull(arr):
        # Full-array block; constant index_map keeps it VMEM-resident across steps.
        return pl.BlockSpec(arr.shape, lambda i: (0,) * arr.ndim)

    in_specs = [
        pl.BlockSpec((TB, Si), lambda i: (i, 0)),
        pl.BlockSpec((TB, Ai), lambda i: (i, 0)),
        wfull(w1s), wfull(w1a), wfull(b1f),
        wfull(w2f), wfull(b2f), wfull(wc),
        pl.BlockSpec(memory_space=pltpu.MemorySpace.SMEM),
    ]
    out_spec = pl.BlockSpec((2, TB), lambda i: (0, i))

    weight_bytes = sum(int(a.size) * a.dtype.itemsize
                       for a in (w1s, w1a, b1f, w2f, b2f, wc, bc))
    io_bytes = Bp * F * 4 + 2 * Bp * 4
    flops = 2 * Bp * (F * H2 + H2 * H2 + 2 * Hp)
    cost = pl.CostEstimate(flops=flops, transcendentals=0,
                           bytes_accessed=io_bytes + weight_bytes)

    # Explicit scoped-VMEM budget: double-buffered per-batch tiles + weights +
    # headroom for f32 intermediates (v5e default scoped limit is only 16 MiB).
    vmem_bytes = (2 * TB * F * 4          # double-buffered input tiles
                  + 2 * 2 * TB * 4        # double-buffered output tile
                  + 2 * weight_bytes      # weights (default double-buffered)
                  + 6 * TB * H2 * 4       # activation intermediates headroom
                  + (4 << 20))
    vmem_limit = int(min(vmem_bytes, 64 << 20))

    q = pl.pallas_call(
        qnetwork_kernel,
        out_shape=jax.ShapeDtypeStruct((2, Bp), jnp.float32),
        grid_spec=pltpu.PrefetchScalarGridSpec(
            num_scalar_prefetch=0,
            grid=grid,
            in_specs=in_specs,
            out_specs=out_spec,
        ),
        compiler_params=pltpu.CompilerParams(
            dimension_semantics=("parallel",),
            vmem_limit_bytes=vmem_limit),
        cost_estimate=cost,
        interpret=interpret,
    )(state, action, w1s, w1a, b1f, w2f, b2f, wc, bc)

    q1 = q[0, :B].reshape(B, 1)
    q2 = q[1, :B].reshape(B, 1)
    return q1, q2


def xavier_uniform(key, fan_in, fan_out):
    # torch.nn.init.xavier_uniform_ (gain=1); stored pre-transposed as [in, out].
    bound = math.sqrt(6.0 / (fan_in + fan_out))
    return jax.random.uniform(key, (fan_in, fan_out), jnp.float32, -bound, bound)


def init_params(key, num_inputs, num_actions, hidden_dim):
    F = num_inputs + num_actions
    ks = jax.random.split(key, 6)
    w1 = xavier_uniform(ks[0], F, hidden_dim);          b1 = jnp.zeros((hidden_dim,), jnp.float32)
    w2 = xavier_uniform(ks[1], hidden_dim, hidden_dim); b2 = jnp.zeros((hidden_dim,), jnp.float32)
    w3 = xavier_uniform(ks[2], hidden_dim, 1);          b3 = jnp.zeros((1,), jnp.float32)
    w4 = xavier_uniform(ks[3], F, hidden_dim);          b4 = jnp.zeros((hidden_dim,), jnp.float32)
    w5 = xavier_uniform(ks[4], hidden_dim, hidden_dim); b5 = jnp.zeros((hidden_dim,), jnp.float32)
    w6 = xavier_uniform(ks[5], hidden_dim, 1);          b6 = jnp.zeros((1,), jnp.float32)
    return (w1, b1, w2, b2, w3, b3, w4, b4, w5, b5, w6, b6)


def reference_forward(state, action, params):
    # Mirrors the kernel's numerics (bf16 matmul inputs / split state-action
    # dots, f32 accumulation and ReLU, f32 VPU head reduction) so the check
    # can use a tight tolerance.
    w1, b1, w2, b2, w3, b3, w4, b4, w5, b5, w6, b6 = params
    Si = state.shape[1]
    bf = lambda a: a.astype(jnp.bfloat16).astype(jnp.float32)
    s = bf(state)
    a = bf(action)

    def head(wa, ba, wb, bb, wc, bc):
        h = s @ bf(wa[:Si]) + a @ bf(wa[Si:]) + ba.reshape(1, -1)
        h = jnp.maximum(h, 0.0)
        h = bf(h) @ bf(wb) + bb.reshape(1, -1)
        h = jnp.maximum(h, 0.0)
        return jnp.sum(h * wc.reshape(1, -1), axis=-1, keepdims=True) + bc

    return head(w1, b1, w2, b2, w3, b3), head(w4, b4, w5, b5, w6, b6)


if __name__ == "__main__":
    key = jax.random.PRNGKey(0)
    k_param, k_state, k_action = jax.random.split(key, 3)

    batch, num_inputs, num_actions, hidden_dim = 8, 16, 4, 32
    params = init_params(k_param, num_inputs, num_actions, hidden_dim)
    state = jax.random.normal(k_state, (batch, num_inputs), dtype=jnp.float32)
    action = jax.random.normal(k_action, (batch, num_actions), dtype=jnp.float32)

    q1, q2 = qnetwork_forward(state, action, params)
    q1, q2 = jax.block_until_ready((q1, q2))

    r1, r2 = reference_forward(state, action, params)
    assert q1.shape == (batch, 1) and q2.shape == (batch, 1)
    assert jnp.allclose(q1, r1, atol=1e-3, rtol=1e-3)
    assert jnp.allclose(q2, r2, atol=1e-3, rtol=1e-3)

    print("KERNEL_OK")
</pallas_src>

<mosaic_0001>
module attributes {stable_mosaic.version = 11 : i64} {
  func.func @qnetwork_kernel(%arg0: i32, %arg1: memref<8x16xf32, #tpu.memory_space<vmem>>, %arg2: memref<8x4xf32, #tpu.memory_space<vmem>>, %arg3: memref<16x256xbf16, #tpu.memory_space<vmem>>, %arg4: memref<4x256xbf16, #tpu.memory_space<vmem>>, %arg5: memref<1x256xf32, #tpu.memory_space<vmem>>, %arg6: memref<256x256xbf16, #tpu.memory_space<vmem>>, %arg7: memref<1x256xf32, #tpu.memory_space<vmem>>, %arg8: memref<2x128xf32, #tpu.memory_space<vmem>>, %arg9: memref<2xf32, #tpu.memory_space<smem>>, %arg10: memref<2x8xf32, #tpu.memory_space<vmem>>) attributes {dimension_semantics = [#tpu.dimension_semantics<parallel>], iteration_bounds = array<i64: 1>, scalar_prefetch = 0 : i64, scratch_operands = 0 : i64, tpu.core_type = #tpu.core_type<tc>, window_params = [{transform_indices = @transform_0, window_bounds = array<i64: 8, 16>}, {transform_indices = @transform_1, window_bounds = array<i64: 8, 4>}, {pipeline_mode = #tpu.pipeline_mode<synchronous>, transform_indices = @transform_2, window_bounds = array<i64: 16, 256>}, {pipeline_mode = #tpu.pipeline_mode<synchronous>, transform_indices = @transform_3, window_bounds = array<i64: 4, 256>}, {pipeline_mode = #tpu.pipeline_mode<synchronous>, transform_indices = @transform_4, window_bounds = array<i64: 1, 256>}, {pipeline_mode = #tpu.pipeline_mode<synchronous>, transform_indices = @transform_5, window_bounds = array<i64: 256, 256>}, {pipeline_mode = #tpu.pipeline_mode<synchronous>, transform_indices = @transform_6, window_bounds = array<i64: 1, 256>}, {pipeline_mode = #tpu.pipeline_mode<synchronous>, transform_indices = @transform_7, window_bounds = array<i64: 2, 128>}, {transform_indices = @transform_8, window_bounds = array<i64: 2>}, {transform_indices = @transform_9, window_bounds = array<i64: 2, 8>}]} {
    %c0 = arith.constant 0 : index
    %c0_0 = arith.constant 0 : index
    %0 = vector.load %arg1[%c0, %c0_0] : memref<8x16xf32, #tpu.memory_space<vmem>>, vector<8x16xf32>
    %1 = arith.truncf %0 : vector<8x16xf32> to vector<8x16xbf16>
    %c0_1 = arith.constant 0 : index
    %c0_2 = arith.constant 0 : index
    %2 = vector.load %arg2[%c0_1, %c0_2] : memref<8x4xf32, #tpu.memory_space<vmem>>, vector<8x4xf32>
    %3 = arith.truncf %2 : vector<8x4xf32> to vector<8x4xbf16>
    %c0_3 = arith.constant 0 : index
    %c0_4 = arith.constant 0 : index
    %4 = vector.load %arg3[%c0_3, %c0_4] : memref<16x256xbf16, #tpu.memory_space<vmem>>, vector<16x256xbf16>
    %cst = arith.constant dense<0.000000e+00> : vector<8x256xf32>
    %5 = tpu.matmul %1, %4, %cst {dimension_numbers = #tpu.dot_dimension_numbers<[1], [0], [0], [1], [0, 0, 1, 1], [], []>} : vector<8x16xbf16>, vector<16x256xbf16>, vector<8x256xf32> -> vector<8x256xf32>
    %c0_5 = arith.constant 0 : index
    %c0_6 = arith.constant 0 : index
    %6 = vector.load %arg4[%c0_5, %c0_6] : memref<4x256xbf16, #tpu.memory_space<vmem>>, vector<4x256xbf16>
    %cst_7 = arith.constant dense<0.000000e+00> : vector<8x256xf32>
    %7 = tpu.matmul %3, %6, %cst_7 {dimension_numbers = #tpu.dot_dimension_numbers<[1], [0], [0], [1], [0, 0, 1, 1], [], []>} : vector<8x4xbf16>, vector<4x256xbf16>, vector<8x256xf32> -> vector<8x256xf32>
    %8 = arith.addf %5, %7 : vector<8x256xf32>
    %c0_8 = arith.constant 0 : index
    %c0_9 = arith.constant 0 : index
    %9 = vector.load %arg5[%c0_8, %c0_9] : memref<1x256xf32, #tpu.memory_space<vmem>>, vector<1x256xf32>
    %10 = vector.broadcast %9 : vector<1x256xf32> to vector<8x256xf32>
    %11 = arith.addf %8, %10 : vector<8x256xf32>
    %cst_10 = arith.constant 0.000000e+00 : f32
    %12 = vector.broadcast %cst_10 : f32 to vector<8x256xf32>
    %13 = arith.maximumf %11, %12 : vector<8x256xf32>
    %14 = arith.truncf %13 : vector<8x256xf32> to vector<8x256xbf16>
    %c0_11 = arith.constant 0 : index
    %c0_12 = arith.constant 0 : index
    %15 = vector.load %arg6[%c0_11, %c0_12] : memref<256x256xbf16, #tpu.memory_space<vmem>>, vector<256x256xbf16>
    %cst_13 = arith.constant dense<0.000000e+00> : vector<8x256xf32>
    %16 = tpu.matmul %14, %15, %cst_13 {dimension_numbers = #tpu.dot_dimension_numbers<[1], [0], [0], [1], [0, 0, 1, 1], [], []>} : vector<8x256xbf16>, vector<256x256xbf16>, vector<8x256xf32> -> vector<8x256xf32>
    %c0_14 = arith.constant 0 : index
    %c0_15 = arith.constant 0 : index
    %17 = vector.load %arg7[%c0_14, %c0_15] : memref<1x256xf32, #tpu.memory_space<vmem>>, vector<1x256xf32>
    %18 = vector.broadcast %17 : vector<1x256xf32> to vector<8x256xf32>
    %19 = arith.addf %16, %18 : vector<8x256xf32>
    %cst_16 = arith.constant 0.000000e+00 : f32
    %20 = vector.broadcast %cst_16 : f32 to vector<8x256xf32>
    %21 = arith.maximumf %19, %20 : vector<8x256xf32>
    %22 = vector.extract_strided_slice %21 {offsets = [0, 0], sizes = [8, 128], strides = [1, 1]} : vector<8x256xf32> to vector<8x128xf32>
    %c0_17 = arith.constant 0 : index
    %c0_18 = arith.constant 0 : index
    %23 = vector.load %arg8[%c0_17, %c0_18] : memref<2x128xf32, #tpu.memory_space<vmem>>, vector<1x128xf32>
    %24 = vector.broadcast %23 : vector<1x128xf32> to vector<8x128xf32>
    %25 = arith.mulf %22, %24 : vector<8x128xf32>
    %cst_19 = arith.constant dense<0.000000e+00> : vector<8xf32>
    %26 = vector.multi_reduction <add>, %25, %cst_19 [1] : vector<8x128xf32> to vector<8xf32>
    %c0_20 = arith.constant 0 : index
    %27 = memref.load %arg9[%c0_20] : memref<2xf32, #tpu.memory_space<smem>>
    %28 = vector.broadcast %27 : f32 to vector<8xf32>
    %29 = arith.addf %26, %28 : vector<8xf32>
    %30 = vector.extract_strided_slice %21 {offsets = [0, 128], sizes = [8, 128], strides = [1, 1]} : vector<8x256xf32> to vector<8x128xf32>
    %c1 = arith.constant 1 : index
    %c0_21 = arith.constant 0 : index
    %31 = vector.load %arg8[%c1, %c0_21] : memref<2x128xf32, #tpu.memory_space<vmem>>, vector<1x128xf32>
    %32 = vector.broadcast %31 : vector<1x128xf32> to vector<8x128xf32>
    %33 = arith.mulf %30, %32 : vector<8x128xf32>
    %cst_22 = arith.constant dense<0.000000e+00> : vector<8xf32>
    %34 = vector.multi_reduction <add>, %33, %cst_22 [1] : vector<8x128xf32> to vector<8xf32>
    %c1_23 = arith.constant 1 : index
    %35 = memref.load %arg9[%c1_23] : memref<2xf32, #tpu.memory_space<smem>>
    %36 = vector.broadcast %35 : f32 to vector<8xf32>
    %37 = arith.addf %34, %36 : vector<8xf32>
    %38 = vector.shape_cast %29 : vector<8xf32> to vector<1x8xf32>
    %39 = vector.shape_cast %37 : vector<8xf32> to vector<1x8xf32>
    %40 = tpu.concatenate %38, %39 in 0 : vector<1x8xf32>, vector<1x8xf32> -> vector<2x8xf32>
    %c0_24 = arith.constant 0 : index
    %c0_25 = arith.constant 0 : index
    %41 = vector.load %arg10[%c0_24, %c0_25] : memref<2x8xf32, #tpu.memory_space<vmem>>, vector<2x8xf32>
    tpu.vector_store %arg10[%c0_24, %c0_25], %40 {strides = array<i32>} : memref<2x8xf32, #tpu.memory_space<vmem>>, vector<2x8xf32>,
    return
  }
  func.func @transform_0(%arg0: i32) -> (i32, i32) {
    %c0_i32 = arith.constant 0 : i32
    %c0_i32_0 = arith.constant 0 : i32
    return %arg0, %c0_i32 : i32, i32
  }
  func.func @transform_1(%arg0: i32) -> (i32, i32) {
    %c0_i32 = arith.constant 0 : i32
    %c0_i32_0 = arith.constant 0 : i32
    return %arg0, %c0_i32 : i32, i32
  }
  func.func @transform_2(%arg0: i32) -> (i32, i32) {
    %c0_i32 = arith.constant 0 : i32
    %c0_i32_0 = arith.constant 0 : i32
    %c0_i32_1 = arith.constant 0 : i32
    return %c0_i32, %c0_i32_0 : i32, i32
  }
  func.func @transform_3(%arg0: i32) -> (i32, i32) {
    %c0_i32 = arith.constant 0 : i32
    %c0_i32_0 = arith.constant 0 : i32
    %c0_i32_1 = arith.constant 0 : i32
    return %c0_i32, %c0_i32_0 : i32, i32
  }
  func.func @transform_4(%arg0: i32) -> (i32, i32) {
    %c0_i32 = arith.constant 0 : i32
    %c0_i32_0 = arith.constant 0 : i32
    %c0_i32_1 = arith.constant 0 : i32
    return %c0_i32, %c0_i32_0 : i32, i32
  }
  func.func @transform_5(%arg0: i32) -> (i32, i32) {
    %c0_i32 = arith.constant 0 : i32
    %c0_i32_0 = arith.constant 0 : i32
    %c0_i32_1 = arith.constant 0 : i32
    return %c0_i32, %c0_i32_0 : i32, i32
  }
  func.func @transform_6(%arg0: i32) -> (i32, i32) {
    %c0_i32 = arith.constant 0 : i32
    %c0_i32_0 = arith.constant 0 : i32
    %c0_i32_1 = arith.constant 0 : i32
    return %c0_i32, %c0_i32_0 : i32, i32
  }
  func.func @transform_7(%arg0: i32) -> (i32, i32) {
    %c0_i32 = arith.constant 0 : i32
    %c0_i32_0 = arith.constant 0 : i32
    %c0_i32_1 = arith.constant 0 : i32
    return %c0_i32, %c0_i32_0 : i32, i32
  }
  func.func @transform_8(%arg0: i32) -> i32 {
    %c0_i32 = arith.constant 0 : i32
    %c0_i32_0 = arith.constant 0 : i32
    return %c0_i32 : i32
  }
  func.func @transform_9(%arg0: i32) -> (i32, i32) {
    %c0_i32 = arith.constant 0 : i32
    %c0_i32_0 = arith.constant 0 : i32
    return %c0_i32, %arg0 : i32, i32
  }
}

</mosaic_0001>

<bundles_post_ra>
// kernel: tpu_custom_call.1
= control target key start
LH: loop header
LB: loop body
LE: loop exit
PB: predicated region body
PF: predicated region fallthrough
CT: control target
= control target key end

     0   :  { %14 = vsyncpa [#allocation3], 0  ;;  %s830_s0 = inlined_call_operand.hbm [shape: f32[8,16], index: 0, kind: input, shape index: {}]   ;;  %s831_s1 = inlined_call_operand.vmem [shape: f32[8,4], index: 1, kind: input, shape index: {}]   ;;  %s832_s2 = inlined_call_operand.vmem [shape: bf16[16,256], index: 2, kind: input, shape index: {}]   ;;  %s833_s3 = inlined_call_operand.vmem [shape: bf16[4,256], index: 3, kind: input, shape index: {}]   ;;  %s834_s4 = inlined_call_operand.vmem [shape: f32[1,256], index: 4, kind: input, shape index: {}]   ;;  %s835_s5 = inlined_call_operand.hbm [shape: bf16[256,256], index: 5, kind: input, shape index: {}]   ;;  %s836_s6 = inlined_call_operand.vmem [shape: f32[1,256], index: 6, kind: input, shape index: {}]   ;;  %s837_s7 = inlined_call_operand.vmem [shape: f32[2,128], index: 7, kind: input, shape index: {}]   ;;  %s838_s8 = inlined_call_operand.vmem [shape: f32[2], index: 8, kind: input, shape index: {}]   ;;  %s839_s9 = inlined_call_operand.hbm [shape: f32[2,8], index: 9, kind: output, shape index: {}]  }
   0x1   :  { %15 = vsyncpa [#allocation7], 0 }
   0x2   :  { %16 = vsyncpa [#allocation5], 0 }
   0x3   :  { %17 = vsyncpa [#allocation4], 0  ;;  %s703_s30 = smov [#allocation2]   ;;  %s704_s11 = smov [#allocation6]  }
   0x4   :  { %s24_s10 = sshll.u32 %s703_s30, 4  ;;  %s41_s12 = sshll.u32 %s704_s11, 4  ;;  %s25_s10 = int_to_ptr.vmem [resolvable:$true] %s24_s10  ;;  %s760_s12 = int_to_ptr.vmem [resolvable:$true] %s41_s12 }
   0x5   :  { %s617_s15 = scalar_lea.hbm %s830_s0, 128 }
   0x6   :  { %p618_p0 = scmp.ne.s32.totalorder %s830_s0, %s617_s15  ;;  %p621_p1 = scmp.lt.u32.totalorder %s617_s15, %s830_s0 }
   0x8   :  { %p623_p2 = pnand %p621_p1, %p618_p0 }
   0xa   :  { %626 = shalt.err (!%p623_p2)
}
   0xb   :  { %s627_s20 = scalar_lea.vmem %s25_s10, 128  ;;  %p632_p4 = scmp.lt.s32.totalorder %s25_s10, %s25_s10 }
   0xc   :  { %p628_p3 = scmp.ne.s32.totalorder %s25_s10, %s627_s20  ;;  %p633_p5 = scmp.lt.s32.totalorder %s627_s20, %s627_s20 }
   0xe   :  { %p634_p6 = por %p633_p5, %p632_p4 }
  0x10   :  { %p635_p7 = pnand %p634_p6, %p628_p3 }
  0x12   :  { %638 = shalt.err (!%p635_p7)
}
  0x13   :  { %27 = dma.hbm_to_vmem [thread:$0]  %s830_s0, 128, %s25_s10, [#allocation3]  }
  0x14   :  { %s639_s25 = scalar_lea.hbm %s835_s5, 4096 }
  0x15   :  { %p640_p8 = scmp.ne.s32.totalorder %s835_s5, %s639_s25  ;;  %p643_p9 = scmp.lt.u32.totalorder %s639_s25, %s835_s5 }
  0x17   :  { %p645_p10 = pnand %p643_p9, %p640_p8 }
  0x19   :  { %648 = shalt.err (!%p645_p10)
}
  0x1a   :  { %s649_s30 = scalar_lea.vmem %s760_s12, 4096  ;;  %p654_p12 = scmp.lt.s32.totalorder %s760_s12, %s760_s12 }
  0x1b   :  { %p650_p11 = scmp.ne.s32.totalorder %s760_s12, %s649_s30  ;;  %p655_p13 = scmp.lt.s32.totalorder %s649_s30, %s649_s30 }
  0x1d   :  { %p656_p0 = por %p655_p13, %p654_p12 }
  0x1f   :  { %p657_p1 = pnand %p656_p0, %p650_p11 }
  0x21   :  { %660 = shalt.err (!%p657_p1)
}
  0x22   :  { %s705_s0 = smov 128   ;;  %s706_s10 = smov 8  }
  0x23   :  { %47 = dma.hbm_to_vmem [thread:$0]  %s835_s5, 4096, %s760_s12, [#allocation7], %s705_s0, %s705_s0, %s706_s10  }
  0x24   :  { %s58_s16 = sshll.u32 %s838_s8, 4  ;;  %s59_s16 = int_to_ptr.vmem [resolvable:$true] %s58_s16 }
  0x25   :  { %s661_s17 = scalar_lea.vmem %s59_s16, 16  ;;  %p666_p3 = scmp.lt.s32.totalorder %s59_s16, %s59_s16 }
  0x26   :  { %p662_p2 = scmp.ne.s32.totalorder %s59_s16, %s661_s17  ;;  %p667_p4 = scmp.lt.s32.totalorder %s661_s17, %s661_s17 }
  0x28   :  { %p668_p5 = por %p667_p4, %p666_p3 }
  0x2a   :  { %p669_p6 = pnand %p668_p5, %p662_p2 }
  0x2c   :  { %672 = shalt.err (!%p669_p6)
}
  0x2d   :  { %s707_s18 = smov [#allocation8]  }
  0x2e   :  { %61 = dma.vmem_to_smem %s59_s16, 16, %s707_s18, [#allocation5]  }
  0x2f   :  { %695 = dma.done.wait [#allocation3], 128  }
  0x30   :  { %696 = vsyncadd [#allocation3], 4294967168 }
  0x31   :  { %697 = dma.done.wait [#allocation7], 4096  }
  0x32   :  { %698 = vsyncadd [#allocation7], 4294963200 }
  0x33   :  { %699 = dma.done.wait [#allocation5], 16  }
  0x34   :  { %700 = vsyncadd [#allocation5], 4294967280 }
  0x35   :  { %71 = sfence }
  0x36   :  { %v518_v0 = vld.sshfl [vmem:[%s833_s3] sm:$0x33 pattern:$0x76325410]  ;;  %vm93_vm0 = vcmask 1041408   ;;  %v708_v3 = vmov 0   ;;  %v198_v42 = vlaneseq }
  0x37   :  { %v88_v1 = vcombine.high %v518_v0, %v518_v0  ;;  %v95_v2 = vsel %vm93_vm0, %v518_v0, 0  ;;  %132 = vmatprep.mubr.bf16.mxu1 %v708_v3  ;;  %v75_v4 = vld [vmem:[%s831_s1] sm:$0xff]  ;;  %v569_v8 = vld [vmem:[#allocation6 + $0x4] ss:$8 sps:$4 sm:$0xff]   ;;  %vm89_vm1 = vcmask 31744   ;;  %vm151_vm2 = vcmask 130048  }
  0x38   :  { %v566_v5 = vld [vmem:[%s832_s2] ss:$8 sps:$4 sm:$0xff]   ;;  %v568_v6 = vld [vmem:[%s832_s2 + $0x4] ss:$8 sps:$4 sm:$0xff]   ;;  %v76_v7 = vpack.c.bf16 %v75_v4, %v75_v4  ;;  %418 = vmatprep.subr.bf16.mxu0 %v569_v8  ;;  %v199_v43 = vshrl.u32 %v198_v42, 7  ;;  %s558_s28 = sld [smem:[#allocation8 + $0x1]] }
  0x39   :  { %519 = vmatprep.subr.msk.bf16.mxu1 %vm93_vm0, %v88_v1  ;;  %v571_v9 = vld [vmem:[#allocation6] ss:$8 sps:$4 sm:$0xff]   ;;  %v572_v10 = vld [vmem:[#allocation6 + $0x14] ss:$8 sps:$4 sm:$0xff]   ;;  %v574_v11 = vld [vmem:[#allocation6 + $0x10] ss:$8 sps:$4 sm:$0xff]  }
  0x3a   :  { %101 = vmatpush1.bf16.msra.mxu1 %v95_v2  ;;  %419 = vmatpush1.bf16.msra.mxu0 %v571_v9  ;;  %v575_v12 = vld [vmem:[#allocation6 + $0x24] ss:$8 sps:$4 sm:$0xff]   ;;  %v73_v13 = vld [vmem:[#allocation2] sm:$0xff]  ;;  %v577_v14 = vld [vmem:[#allocation6 + $0x20] ss:$8 sps:$4 sm:$0xff]   ;;  %v200_v48 = vsub.s32 0, %v199_v43 }
  0x3b   :  { %155 = vmatprep.subr.bf16.mxu1 %v568_v6  ;;  %420 = vmatprep.subr.bf16.mxu0 %v572_v10  ;;  %v74_v15 = vpack.c.bf16 %v73_v13, %v73_v13  ;;  %v578_v16 = vld [vmem:[#allocation6 + $0x34] ss:$8 sps:$4 sm:$0xff]   ;;  %v580_v17 = vld [vmem:[#allocation6 + $0x30] ss:$8 sps:$4 sm:$0xff]   ;;  %v581_v18 = vld [vmem:[#allocation6 + $0x44] ss:$8 sps:$4 sm:$0xff]  }
  0x3c   :  { %v583_v19 = vld [vmem:[#allocation6 + $0x40] ss:$8 sps:$4 sm:$0xff]   ;;  %v584_v20 = vld [vmem:[#allocation6 + $0x54] ss:$8 sps:$4 sm:$0xff]   ;;  %v586_v21 = vld [vmem:[#allocation6 + $0x50] ss:$8 sps:$4 sm:$0xff]  }
  0x3d   :  { %520 = vmatmul.mubr.msk.bf16.vlgmr.msra.gmra.mrb[0].mxu1 %vm89_vm1, %v76_v7  ;;  %v587_v22 = vld [vmem:[#allocation6 + $0x64] ss:$8 sps:$4 sm:$0xff]   ;;  %v589_v23 = vld [vmem:[#allocation6 + $0x60] ss:$8 sps:$4 sm:$0xff]   ;;  %v590_v24 = vld [vmem:[#allocation6 + $0x74] ss:$8 sps:$4 sm:$0xff]  }
  0x3e   :  { %156 = vmatpush1.bf16.msra.mxu1 %v566_v5  ;;  %187 = vmatprep.mubr.bf16.mxu1 %v708_v3  ;;  %v592_v25 = vld [vmem:[#allocation6 + $0x70] ss:$8 sps:$4 sm:$0xff]   ;;  %v593_v26 = vld [vmem:[#allocation6 + $0x84] ss:$8 sps:$4 sm:$0xff]   ;;  %v595_v27 = vld [vmem:[#allocation6 + $0x80] ss:$8 sps:$4 sm:$0xff]  }
  0x3f   :  { %421 = vmatpush1.bf16.msra.mxu0 %v574_v11  ;;  %v596_v28 = vld [vmem:[#allocation6 + $0x94] ss:$8 sps:$4 sm:$0xff]   ;;  %v598_v29 = vld [vmem:[#allocation6 + $0x90] ss:$8 sps:$4 sm:$0xff]   ;;  %v599_v30 = vld [vmem:[#allocation6 + $0xa4] ss:$8 sps:$4 sm:$0xff]  }
  0x40   :  { %422 = vmatprep.subr.bf16.mxu0 %v575_v12  ;;  %v601_v31 = vld [vmem:[#allocation6 + $0xa0] ss:$8 sps:$4 sm:$0xff]   ;;  %v602_v32 = vld [vmem:[#allocation6 + $0xb4] ss:$8 sps:$4 sm:$0xff]   ;;  %v604_v33 = vld [vmem:[#allocation6 + $0xb0] ss:$8 sps:$4 sm:$0xff]  }
  0x41   :  { %v605_v34 = vld [vmem:[#allocation6 + $0xc4] ss:$8 sps:$4 sm:$0xff]   ;;  %v607_v35 = vld [vmem:[#allocation6 + $0xc0] ss:$8 sps:$4 sm:$0xff]   ;;  %v608_v36 = vld [vmem:[#allocation6 + $0xd4] ss:$8 sps:$4 sm:$0xff]  }
  0x42   :  { %v610_v37 = vld [vmem:[#allocation6 + $0xd0] ss:$8 sps:$4 sm:$0xff]   ;;  %v611_v38 = vld [vmem:[#allocation6 + $0xe4] ss:$8 sps:$4 sm:$0xff]   ;;  %v613_v39 = vld [vmem:[#allocation6 + $0xe0] ss:$8 sps:$4 sm:$0xff]  }
  0x43   :  { %423 = vmatpush1.bf16.msra.mxu0 %v577_v14  ;;  %v614_v40 = vld [vmem:[#allocation6 + $0xf4] ss:$8 sps:$4 sm:$0xff]   ;;  %v616_v41 = vld [vmem:[#allocation6 + $0xf0] ss:$8 sps:$4 sm:$0xff]   ;;  %v204_v50 = vsub.s32 1, %v199_v43  ;;  %s709_s29 = smov [#allocation9]  }
  0x44   :  { %424 = vmatprep.subr.bf16.mxu0 %v578_v16  ;;  %v196_v49 = vld [vmem:[%s834_s4] sm:$0x3]  ;;  %v485_v16 = vand.u32 127, %v198_v42  ;;  %s507_s30 = sshll.u32 %s709_s29, 4  ;;  %vm497_vm3 = vcmask 1040384   ;;  %vm499_vm4 = vcmask 58368   ;;  %s508_s30 = int_to_ptr.vmem [resolvable:$true] %s507_s30 }
  0x45   :  { %523 = vmatmul.mubr.msk.bf16.vlgmr.msra.gmra.mrb[4].mxu1 %vm151_vm2, %v74_v15  ;;  %v201_v51 = vrot.slane %v196_v49, %v200_v48  ;;  %v205_v53 = vrot.slane %v196_v49, %v204_v50  ;;  %v246_v1 = vld [vmem:[%s836_s6] sm:$0x3]  ;;  %s469_s6 = sld [smem:[#allocation8]]  ;;  %p678_p8 = scmp.lt.s32.totalorder %s508_s30, %s508_s30 }
  0x46   :  { %v251_v2 = vrot.slane %v246_v1, %v200_v48  ;;  %v255_v3 = vrot.slane %v246_v1, %v204_v50  ;;  %v556_v9 = vld [vmem:[%s837_s7] ss:$0 sm:$0xff]  ;;  %v557_v14 = vld [vmem:[%s837_s7 + $0x1] ss:$0 sm:$0xff]  ;;  %s673_s7 = scalar_lea.vmem %s508_s30, 32 }
  0x47   :  { %425 = vmatpush1.bf16.msra.mxu0 %v580_v17  ;;  %p674_p7 = scmp.ne.s32.totalorder %s508_s30, %s673_s7  ;;  %p679_p9 = scmp.lt.s32.totalorder %s673_s7, %s673_s7 }
  0x48   :  { %426 = vmatprep.subr.bf16.mxu0 %v581_v18 }
  0x49   :  { %p680_p10 = por %p679_p9, %p678_p8 }
  0x4b   :  { %427 = vmatpush1.bf16.msra.mxu0 %v583_v19  ;;  %v470_v17 = vstv %s469_s6  ;;  %v481_v19 = vstv %s558_s28  ;;  %p681_p11 = pnand %p680_p10, %p674_p7 }
  0x4c   :  { %428 = vmatprep.subr.bf16.mxu0 %v584_v20  ;;  %v488_v20 = vsub.s32 %v485_v16, %v199_v43 }
  0x4f   :  { %429 = vmatpush1.bf16.msra.mxu0 %v586_v21 }
  0x50   :  { %430 = vmatprep.subr.bf16.mxu0 %v587_v22 }
  0x53   :  { %431 = vmatpush1.bf16.msra.mxu0 %v589_v23 }
  0x54   :  { %432 = vmatprep.subr.bf16.mxu0 %v590_v24 }
  0x57   :  { %433 = vmatpush1.bf16.msra.mxu0 %v592_v25 }
  0x58   :  { %434 = vmatprep.subr.bf16.mxu0 %v593_v26 }
  0x5b   :  { %435 = vmatpush1.bf16.msra.mxu0 %v595_v27 }
  0x5c   :  { %436 = vmatprep.subr.bf16.mxu0 %v596_v28 }
  0x5f   :  { %437 = vmatpush1.bf16.msra.mxu0 %v598_v29 }
  0x60   :  { %438 = vmatprep.subr.bf16.mxu0 %v599_v30 }
  0x63   :  { %439 = vmatpush1.bf16.msra.mxu0 %v601_v31 }
  0x64   :  { %440 = vmatprep.subr.bf16.mxu0 %v602_v32 }
  0x67   :  { %441 = vmatpush1.bf16.msra.mxu0 %v604_v33 }
  0x68   :  { %442 = vmatprep.subr.bf16.mxu0 %v605_v34 }
  0x6b   :  { %443 = vmatpush1.bf16.msra.mxu0 %v607_v35 }
  0x6c   :  { %444 = vmatprep.subr.bf16.mxu0 %v608_v36 }
  0x6f   :  { %445 = vmatpush1.bf16.msra.mxu0 %v610_v37 }
  0x70   :  { %446 = vmatprep.subr.bf16.mxu0 %v611_v38 }
  0x73   :  { %447 = vmatpush1.bf16.msra.mxu0 %v613_v39 }
  0x74   :  { %448 = vmatprep.subr.bf16.mxu0 %v614_v40 }
  0x77   :  { %449 = vmatpush1.bf16.msra.mxu0 %v616_v41 }
 0x110   :  { %v134_v44 = vpop.f32.mrb[0].mxu1 }
 0x111   :  { %v136_v45 = vpop.f32.mrb[1].mxu1 }
 0x112   :  { %v138_v46 = vpop.f32.mrb[2].mxu1 }
 0x113   :  { %v139_v47 = vpop.f32.mrb[3].mxu1 }
 0x118   :  { %v189_v52 = vpop.f32.mrb[4].mxu1 }
 0x119   :  { %v190_v54 = vadd.f32 %v189_v52, %v134_v44  ;;  %v191_v55 = vpop.f32.mrb[5].mxu1 }
 0x11a   :  { %v192_v56 = vadd.f32 %v191_v55, %v136_v45  ;;  %v193_v57 = vpop.f32.mrb[6].mxu1 }
 0x11b   :  { %v208_v58 = vadd.f32 %v201_v51, %v190_v54  ;;  %v194_v59 = vpop.f32.mrb[7].mxu1 }
 0x11c   :  { %v209_v60 = vadd.f32 %v205_v53, %v192_v56 }
 0x11d   :  { %v210_v61 = vmax.f32 %v208_v58, 0.0 }
 0x11e   :  { %v211_v62 = vmax.f32 %v209_v60, 0.0 }
 0x11f   :  { %v212_v0 = vpack.c.bf16 %v210_v61, %v210_v61 }
 0x120   :  { %v213_v63 = vpack.c.bf16 %v211_v62, %v211_v62 }
 0x122   :  { %450 = vmatprep.mubr.bf16.mxu0 %v213_v63 }
 0x123   :  { %451 = vmatmul.mubr.bf16.vlgmr.msra.gmra.mrb[0].mxu0 %v212_v0 }
 0x1f6   :  { %v452_v4 = vpop.f32.mrb[0].mxu0 }
 0x1f7   :  { %v453_v5 = vadd.f32 %v452_v4, %v251_v2  ;;  %v454_v6 = vpop.f32.mrb[1].mxu0 }
 0x1f8   :  { %v455_v7 = vadd.f32 %v454_v6, %v255_v3  ;;  %v456_v8 = vpop.f32.mrb[2].mxu0 }
 0x1f9   :  { %v459_v10 = vmax.f32 %v453_v5, 0.0  ;;  %v457_v11 = vpop.f32.mrb[3].mxu0 }
 0x1fa   :  { %v460_v12 = vmax.f32 %v455_v7, 0.0 }
 0x1fb   :  { %v466_v13 = vmul.f32 %v556_v9, %v459_v10 }
 0x1fc   :  { %v477_v15 = vmul.f32 %v557_v14, %v460_v12 }
 0x1fd   :  { %467 = vadd.xlane.f32.xlu0 %v466_v13 }
 0x201   :  { %478 = vadd.xlane.f32.xlu0 %v477_v15 }
 0x28a   :  { %v468_v18 = vpop.xlane.xlu0 %467 }
 0x28b   :  { %v471_v21 = vadd.f32 %v470_v17, %v468_v18 }
 0x28d   :  { %v489_v24 = vrot.slane %v471_v21, %v488_v20 }
 0x28e   :  { %v479_v22 = vpop.xlane.xlu0 %478 }
 0x28f   :  { %v482_v23 = vadd.f32 %v481_v19, %v479_v22 }
 0x291   :  { %v495_v25 = vrot.slane %v482_v23, %v488_v20 }
 0x293   :  { %v498_v26 = vsel %vm497_vm3, %v489_v24, %v495_v25 }
 0x294   :  { %500 = vst.msk [vmem:[#allocation9] sm:$0x3] %vm499_vm4, %v498_v26 }
 0x295   :  { %684 = shalt.err (!%p681_p11)
}
 0x296   :  { %s685_s11 = scalar_lea.hbm %s839_s9, 32 }
 0x297   :  { %p686_p12 = scmp.ne.s32.totalorder %s839_s9, %s685_s11  ;;  %p689_p13 = scmp.lt.u32.totalorder %s685_s11, %s839_s9 }
 0x299   :  { %p691_p0 = pnand %p689_p13, %p686_p12 }
 0x29b   :  { %694 = shalt.err (!%p691_p0)
}
 0x29c   :  { %510 = dma.vmem_to_hbm [thread:$0]  %s508_s30, 32, %s839_s9, [#allocation4]  }
 0x29d   :  { %701 = dma.done.wait [#allocation4], 32  }
 0x29e   :  { %702 = vsyncadd [#allocation4], 4294967264 }
 0x29f   :  { %514 = vsyncpa [#allocation3], 1 }
 0x2a0   :  { %515 = vsyncpa [#allocation7], 1 }
 0x2a1   :  { %516 = vsyncpa [#allocation4], 1 }
 0x2a2   :  { %517 = vsyncpa [#allocation5], 1 }

</bundles_post_ra>
